<compile_context>
chip_gen: v6e
topology: v6e:2x2x1
jax: 0.10.0
libtpu: 0.0.40
codegen_flags: <defaults>
</compile_context>

<pallas_src>
import jax
import jax.numpy as jnp
from jax import lax
from jax.experimental import pallas as pl
from jax.experimental.pallas import tpu as pltpu


def recommender_kernel(uvec_ref, svec_ref, w_ref, b_ref, out_ref):
    # uvec/svec: (TB, D) bf16 pre-gathered slabs; w: (1, D) bf16; b: (1,1) f32 in SMEM.
    interaction = uvec_ref[...] * svec_ref[...]                   # (TB, D)  VPU
    # fc(interaction) = interaction @ W.T + b, computed as W (1,D) x interaction (TB,D)
    # contracted over D -> lane-dense (1, TB) on the MXU (f32 accumulation).
    scores = lax.dot_general(
        w_ref[...], interaction,
        dimension_numbers=(((1,), (1,)), ((), ())),
        preferred_element_type=jnp.float32,
    )                                                             # (1, TB)
    out_ref[...] = scores + b_ref[0, 0]                           # scalar bias from SMEM


def music_recommender_forward(user_ids, song_ids, user_emb, song_emb, fc_w, fc_b,
                              *, block_b=4096):
    B = user_ids.shape[0]
    D = user_emb.shape[1]

    # Wrapper-side gather -> contiguous (B, D) slabs, streamed as bf16.
    user_vec = jnp.take(user_emb, user_ids, axis=0).astype(jnp.bfloat16)   # (B, D)
    song_vec = jnp.take(song_emb, song_ids, axis=0).astype(jnp.bfloat16)   # (B, D)

    w = jnp.asarray(fc_w, jnp.float32).reshape(1, D).astype(jnp.bfloat16)  # (1, D)
    b = jnp.asarray(fc_b, jnp.float32).reshape(1, 1)                       # (1, 1) -> SMEM

    # Tiling: large tiles to amortize per-step overhead; at least 2 tiles when the
    # batch allows it (v7x has 2 TCs and the grid axis is "parallel").
    if B >= 2 * 128:
        max_tile = max(128, (pl.cdiv(B, 2) // 128) * 128)   # ~half the batch, 128-aligned
        block_b = min(block_b, max_tile)
    num_tiles = pl.cdiv(B, block_b)
    if num_tiles == 1:
        block_b = max(8, pl.cdiv(B, 8) * 8)                 # single full-extent, sublane-aligned
    b_pad = num_tiles * block_b

    pad_b = b_pad - B
    if pad_b:
        user_vec = jnp.pad(user_vec, ((0, pad_b), (0, 0)))
        song_vec = jnp.pad(song_vec, ((0, pad_b), (0, 0)))

    itemsize = user_vec.dtype.itemsize
    cost = pl.CostEstimate(
        flops=3 * b_pad * D,                                 # mul + dot (advisory)
        transcendentals=0,
        bytes_accessed=2 * b_pad * D * itemsize + D * itemsize + b_pad * 4,
    )

    out = pl.pallas_call(
        recommender_kernel,
        out_shape=jax.ShapeDtypeStruct((1, b_pad), jnp.float32),
        grid_spec=pltpu.PrefetchScalarGridSpec(
            num_scalar_prefetch=0,
            grid=(num_tiles,),
            in_specs=[
                # streamed bf16 embedding slabs: one (TB, D) tile per grid step
                pl.BlockSpec((block_b, D), lambda i: (i, 0)),
                pl.BlockSpec((block_b, D), lambda i: (i, 0)),
                # fc weight stays resident in VMEM across the grid
                pl.BlockSpec((1, D), lambda i: (0, 0)),
                # bias: scalar, lives in SMEM
                pl.BlockSpec(memory_space=pltpu.MemorySpace.SMEM),
            ],
            # lane-dense output: each step writes a full (1, TB) row
            out_specs=pl.BlockSpec((1, block_b), lambda i: (0, i)),
        ),
        compiler_params=pltpu.CompilerParams(
            dimension_semantics=("parallel",),
        ),
        cost_estimate=cost,
    )(user_vec, song_vec, w, b)

    return out.reshape(-1)[:B]   # .squeeze() -> (B,)


def reference_forward(user_ids, song_ids, user_emb, song_emb, fc_w, fc_b):
    """Pure-JAX f32 reference matching the PyTorch forward."""
    user_vec = user_emb[user_ids]                 # (B, D)
    song_vec = song_emb[song_ids]                 # (B, D)
    interaction = user_vec * song_vec             # (B, D)
    return (interaction @ fc_w.T + fc_b.reshape(1, 1)).reshape(-1)  # squeeze -> (B,)


if __name__ == "__main__":
    # Synthetic sizes consistent with the module (small for the demo).
    num_users = 16
    num_songs = 32
    embedding_dim = 50
    batch = 8

    key = jax.random.PRNGKey(0)
    k_ue, k_se, k_w, k_b, k_u, k_s = jax.random.split(key, 6)

    # nn.Embedding ~ N(0,1); nn.Linear ~ U(-1/sqrt(D), 1/sqrt(D)).
    user_emb = jax.random.normal(k_ue, (num_users, embedding_dim), dtype=jnp.float32)
    song_emb = jax.random.normal(k_se, (num_songs, embedding_dim), dtype=jnp.float32)
    bound = 1.0 / (embedding_dim ** 0.5)
    fc_w = jax.random.uniform(k_w, (1, embedding_dim), minval=-bound, maxval=bound,
                              dtype=jnp.float32)
    fc_b = jax.random.uniform(k_b, (1,), minval=-bound, maxval=bound,
                              dtype=jnp.float32)   # torch-style (1,) bias

    user_ids = jax.random.randint(k_u, (batch,), 0, num_users, dtype=jnp.int32)
    song_ids = jax.random.randint(k_s, (batch,), 0, num_songs, dtype=jnp.int32)

    out = music_recommender_forward(user_ids, song_ids, user_emb, song_emb, fc_w, fc_b)
    out = jax.block_until_ready(out)

    ref = reference_forward(user_ids, song_ids, user_emb, song_emb, fc_w, fc_b)
    assert out.shape == (batch,), out.shape
    # bf16-streamed inputs vs f32 reference -> loosened tolerance.
    assert jnp.allclose(out, ref, atol=3e-2, rtol=3e-2), (out, ref)

    print("KERNEL_OK")
</pallas_src>

<mosaic_0001>
module attributes {stable_mosaic.version = 11 : i64} {
  func.func @recommender_kernel(%arg0: i32, %arg1: memref<8x50xbf16, #tpu.memory_space<vmem>>, %arg2: memref<8x50xbf16, #tpu.memory_space<vmem>>, %arg3: memref<1x50xbf16, #tpu.memory_space<vmem>>, %arg4: memref<1x1xf32, #tpu.memory_space<smem>>, %arg5: memref<1x8xf32, #tpu.memory_space<vmem>>) attributes {dimension_semantics = [#tpu.dimension_semantics<parallel>], iteration_bounds = array<i64: 1>, scalar_prefetch = 0 : i64, scratch_operands = 0 : i64, tpu.core_type = #tpu.core_type<tc>, window_params = [{transform_indices = @transform_0, window_bounds = array<i64: 8, 50>}, {transform_indices = @transform_1, window_bounds = array<i64: 8, 50>}, {pipeline_mode = #tpu.pipeline_mode<synchronous>, transform_indices = @transform_2, window_bounds = array<i64: 1, 50>}, {transform_indices = @transform_3, window_bounds = array<i64: 1, 1>}, {transform_indices = @transform_4, window_bounds = array<i64: 1, 8>}]} {
    %c0 = arith.constant 0 : index
    %c0_0 = arith.constant 0 : index
    %0 = vector.load %arg1[%c0, %c0_0] : memref<8x50xbf16, #tpu.memory_space<vmem>>, vector<8x50xbf16>
    %c0_1 = arith.constant 0 : index
    %c0_2 = arith.constant 0 : index
    %1 = vector.load %arg2[%c0_1, %c0_2] : memref<8x50xbf16, #tpu.memory_space<vmem>>, vector<8x50xbf16>
    %2 = arith.mulf %0, %1 : vector<8x50xbf16>
    %c0_3 = arith.constant 0 : index
    %c0_4 = arith.constant 0 : index
    %3 = vector.load %arg3[%c0_3, %c0_4] : memref<1x50xbf16, #tpu.memory_space<vmem>>, vector<1x50xbf16>
    %cst = arith.constant dense<0.000000e+00> : vector<1x8xf32>
    %4 = tpu.matmul %3, %2, %cst {dimension_numbers = #tpu.dot_dimension_numbers<[1], [1], [0], [0], [0, 0, 1, 0], [], []>} : vector<1x50xbf16>, vector<8x50xbf16>, vector<1x8xf32> -> vector<1x8xf32>
    %c0_5 = arith.constant 0 : index
    %c0_6 = arith.constant 0 : index
    %5 = memref.load %arg4[%c0_5, %c0_6] : memref<1x1xf32, #tpu.memory_space<smem>>
    %6 = vector.broadcast %5 : f32 to vector<1x8xf32>
    %7 = arith.addf %4, %6 : vector<1x8xf32>
    %c0_7 = arith.constant 0 : index
    %c0_8 = arith.constant 0 : index
    %8 = vector.load %arg5[%c0_7, %c0_8] : memref<1x8xf32, #tpu.memory_space<vmem>>, vector<1x8xf32>
    tpu.vector_store %arg5[%c0_7, %c0_8], %7 {strides = array<i32>} : memref<1x8xf32, #tpu.memory_space<vmem>>, vector<1x8xf32>,
    return
  }
  func.func @transform_0(%arg0: i32) -> (i32, i32) {
    %c0_i32 = arith.constant 0 : i32
    %c0_i32_0 = arith.constant 0 : i32
    return %arg0, %c0_i32 : i32, i32
  }
  func.func @transform_1(%arg0: i32) -> (i32, i32) {
    %c0_i32 = arith.constant 0 : i32
    %c0_i32_0 = arith.constant 0 : i32
    return %arg0, %c0_i32 : i32, i32
  }
  func.func @transform_2(%arg0: i32) -> (i32, i32) {
    %c0_i32 = arith.constant 0 : i32
    %c0_i32_0 = arith.constant 0 : i32
    %c0_i32_1 = arith.constant 0 : i32
    return %c0_i32, %c0_i32_0 : i32, i32
  }
  func.func @transform_3(%arg0: i32) -> (i32, i32) {
    %c0_i32 = arith.constant 0 : i32
    %c0_i32_0 = arith.constant 0 : i32
    %c0_i32_1 = arith.constant 0 : i32
    return %c0_i32, %c0_i32_0 : i32, i32
  }
  func.func @transform_4(%arg0: i32) -> (i32, i32) {
    %c0_i32 = arith.constant 0 : i32
    %c0_i32_0 = arith.constant 0 : i32
    return %c0_i32, %arg0 : i32, i32
  }
}

</mosaic_0001>

<bundles_post_ra>
// kernel: tpu_custom_call.1
= control target key start
LH: loop header
LB: loop body
LE: loop exit
PB: predicated region body
PF: predicated region fallthrough
CT: control target
= control target key end

     0   :  { %10 = vsyncpa [#allocation4], 0  ;;  %s240_s0 = inlined_call_operand.hbm [shape: bf16[8,50], index: 0, kind: input, shape index: {}]   ;;  %s241_s1 = inlined_call_operand.hbm [shape: bf16[8,50], index: 1, kind: input, shape index: {}]   ;;  %s242_s2 = inlined_call_operand.vmem [shape: bf16[1,50], index: 2, kind: input, shape index: {}]   ;;  %s243_s3 = inlined_call_operand.<no memory space> [shape: f32[1,1], index: 3, kind: input, shape index: {}]   ;;  %s244_s4 = inlined_call_operand.hbm [shape: f32[1,8], index: 4, kind: output, shape index: {}]  }
   0x1   :  { %11 = vsyncpa [#allocation7], 0 }
   0x2   :  { %12 = vsyncpa [#allocation5], 0  ;;  %s195_s15 = smov [#allocation3]   ;;  %s196_s17 = smov [#allocation6]  }
   0x3   :  { %s19_s16 = sshll.u32 %s195_s15, 4  ;;  %s29_s18 = sshll.u32 %s196_s17, 4  ;;  %s20_s16 = int_to_ptr.vmem [resolvable:$true] %s19_s16  ;;  %s30_s18 = int_to_ptr.vmem [resolvable:$true] %s29_s18 }
   0x4   :  { %s137_s19 = scalar_lea.vmem %s20_s16, 64  ;;  %p142_p1 = scmp.lt.s32.totalorder %s20_s16, %s20_s16 }
   0x5   :  { %p138_p0 = scmp.ne.s32.totalorder %s20_s16, %s137_s19  ;;  %p143_p2 = scmp.lt.s32.totalorder %s137_s19, %s137_s19 }
   0x7   :  { %p144_p3 = por %p143_p2, %p142_p1 }
   0x9   :  { %p145_p4 = pnand %p144_p3, %p138_p0 }
   0xb   :  { %148 = shalt.err (!%p145_p4)
}
   0xc   :  { %22 = dma.hbm_to_vmem [thread:$0]  %s240_s0, 64, %s20_s16, [#allocation4]  }
   0xd   :  { %s157_s22 = scalar_lea.vmem %s30_s18, 64  ;;  %p162_p6 = scmp.lt.s32.totalorder %s30_s18, %s30_s18 }
   0xe   :  { %p158_p5 = scmp.ne.s32.totalorder %s30_s18, %s157_s22  ;;  %p163_p7 = scmp.lt.s32.totalorder %s157_s22, %s157_s22 }
  0x10   :  { %p164_p8 = por %p163_p7, %p162_p6 }
  0x12   :  { %p165_p9 = pnand %p164_p8, %p158_p5 }
  0x14   :  { %168 = shalt.err (!%p165_p9)
}
  0x15   :  { %32 = dma.hbm_to_vmem [thread:$0]  %s241_s1, 64, %s30_s18, [#allocation7]  }
  0x16   :  { %189 = dma.done.wait [#allocation4], 64  }
  0x17   :  { %190 = vsyncadd [#allocation4], 4294967232 }
  0x18   :  { %191 = dma.done.wait [#allocation7], 64  }
  0x19   :  { %192 = vsyncadd [#allocation7], 4294967232  ;;  %v197_v0 = vmov 0.0   ;;  %vm198_vm0 = vmmov 0   ;;  %v44_v1 = vld [vmem:[#allocation3] sm:$0xf]  ;;  %v49_v6 = vstv %s243_s3 }
  0x1a   :  { %118 = vmatprep.subr.bf16.mxu0 %v197_v0  ;;  %120 = vmatprep.mubr.msk.bf16.mxu0 %vm198_vm0, %v197_v0  ;;  %v45_v2 = vld [vmem:[#allocation6] sm:$0xf]  ;;  %vm50_vm1 = vcmask 408576   ;;  %v47_v5 = vld [vmem:[%s242_s2] sm:$0x1]  ;;  %s199_s27 = smov [#allocation8]  }
  0x1b   :  { %v46_v3 = vmul.bf16 %v45_v2, %v44_v1  ;;  %s105_s28 = sshll.u32 %s199_s27, 4  ;;  %vm97_vm2 = vcmask 57344   ;;  %s106_s28 = int_to_ptr.vmem [resolvable:$true] %s105_s28 }
  0x1c   :  { %s169_s29 = scalar_lea.vmem %s106_s28, 16  ;;  %s173_s30 = scalar_lea.vmem %s106_s28, 32 }
  0x1d   :  { %v55_v4 = vsel %vm50_vm1, %v46_v3, 0  ;;  %p170_p10 = scmp.ne.s32.totalorder %s106_s28, %s169_s29  ;;  %p174_p11 = scmp.lt.s32.totalorder %s106_s28, %s106_s28 }
  0x1e   :  { %119 = vmatpush3.bf16.xpose.msra.mxu0 %v55_v4  ;;  %p175_p12 = scmp.lt.s32.totalorder %s173_s30, %s169_s29 }
  0x20   :  { %p176_p13 = por %p175_p12, %p174_p11 }
  0x22   :  { %p177_p0 = pnand %p176_p13, %p170_p10 }
  0x25   :  { %121 = vmatmul.mubr.msk.bf16.vlgmr.msra.gmra.mxu0 %vm50_vm1, %v47_v5 }
  0xe5   :  { %v91_v7 = vpop.f32.mrf.mxu0 }
  0xe6   :  { %v92_v8 = vadd.f32 %v91_v7, %v49_v6 }
  0xe7   :  { %v122_v9 = vpop.f32.mrf.mxu0 }
  0xe8   :  { %98 = vst.msk [vmem:[#allocation8] sm:$0x1] %vm97_vm2, %v92_v8 }
  0xe9   :  { %v94_v10 = vpop.f32.mrf.mxu0 }
  0xea   :  { %180 = shalt.err (!%p177_p0)
}
  0xeb   :  { %108 = dma.vmem_to_hbm [thread:$0]  %s106_s28, 16, %s244_s4, [#allocation5]   ;;  %v123_v11 = vpop.f32.mrf.mxu0 }
  0xec   :  { %193 = dma.done.wait [#allocation5], 16  }
  0xed   :  { %194 = vsyncadd [#allocation5], 4294967280 }
  0xee   :  { %112 = vsyncpa [#allocation4], 1 }
  0xef   :  { %113 = vsyncpa [#allocation7], 1 }
  0xf0   :  { %114 = vsyncpa [#allocation5], 1 }

</bundles_post_ra>
